<compile_context>
chip_gen: v7x
topology: tpu7x:2x2x1
jax: 0.10.0
libtpu: 0.0.40
codegen_flags: <defaults>
</compile_context>

<pallas_src>
import functools
import math

import jax
import jax.numpy as jnp
import numpy as np
from jax.experimental import pallas as pl
from jax.experimental.pallas import tpu as pltpu

_LANE = 128
_SUBLANE = 8
# Planning budget that fits every generation's per-TensorCore VMEM with
# headroom (v7x: 64 MiB physical; v5e/v6e: 128 MiB — could be raised there).
_PLAN_BUDGET_BYTES = 40 * 1024 * 1024


def _round_up(v, m):
    return ((v + m - 1) // m) * m


# ----------------------------------------------------------------------------
# Kernel bodies
# ----------------------------------------------------------------------------
def _epilogue(y_f32, b_f32, weight_gain, bias_gain, activation, out_dtype):
    """Fused gain / bias / activation on an f32 (tm, tn) tile."""
    y = y_f32 * np.float32(weight_gain)
    if b_f32 is not None:
        y = y + b_f32 * np.float32(bias_gain)
    if activation == "lrelu":
        g = np.float32(np.sqrt(2.0))
        y = y * jnp.where(y >= 0, g, np.float32(0.2) * g)
    elif activation == "relu":
        y = jnp.maximum(y, 0.0) * np.float32(np.sqrt(2.0))
    # 'linear' -> no-op
    return y.astype(out_dtype)


def _fc_kernel_single(*refs, weight_gain, bias_gain, activation, has_bias):
    """Single K-step: no accumulator scratch, direct write to o_ref."""
    if has_bias:
        x_ref, w_ref, b_ref, o_ref = refs
    else:
        x_ref, w_ref, o_ref = refs
        b_ref = None
    # w tile is (tn, tk) in the weight's native (N, K) layout; the in-kernel
    # transpose rides the XLU (idle next to the MXU), accumulation is f32.
    y = jnp.dot(x_ref[...], w_ref[...].T, preferred_element_type=jnp.float32)
    b = b_ref[...].astype(jnp.float32) if has_bias else None
    o_ref[...] = _epilogue(y, b, weight_gain, bias_gain, activation,
                           o_ref.dtype)


def _fc_kernel_multi(*refs, weight_gain, bias_gain, activation, has_bias):
    """Multi K-step: f32 VMEM accumulator, pl.when init/finalize."""
    if has_bias:
        x_ref, w_ref, b_ref, o_ref, acc_ref = refs
    else:
        x_ref, w_ref, o_ref, acc_ref = refs
        b_ref = None
    k = pl.program_id(2)

    @pl.when(k == 0)
    def _():
        acc_ref[...] = jnp.zeros_like(acc_ref)

    acc_ref[...] += jnp.dot(x_ref[...], w_ref[...].T,
                            preferred_element_type=jnp.float32)

    @pl.when(k == pl.num_programs(2) - 1)
    def _():
        b = b_ref[...].astype(jnp.float32) if has_bias else None
        o_ref[...] = _epilogue(acc_ref[...], b, weight_gain, bias_gain,
                               activation, o_ref.dtype)


# ----------------------------------------------------------------------------
# Tile planning
# ----------------------------------------------------------------------------
def _divisor_tiles(dim_pad, cap):
    """128-multiples <= cap that evenly divide dim_pad, descending."""
    out = []
    t = (min(cap, dim_pad) // _LANE) * _LANE
    while t >= _LANE:
        if dim_pad % t == 0:
            out.append(t)
        t -= _LANE
    return out


def _footprint(tm, tn, tk, op_isz, out_isz, multi_k):
    in_b = 2 * (tm * tk + tn * tk) * op_isz      # double-buffered x / w tiles
    out_b = 2 * tm * tn * out_isz                # double-buffered output tile
    bias_b = 2 * tn * 4
    acc_b = tm * tn * 4 if multi_k else 0        # f32 accumulator scratch
    return in_b + out_b + bias_b + acc_b


def _plan(M, N, K, op_isz, out_isz, budget):
    K_pad = _round_up(K, _LANE)
    N_pad = _round_up(N, _LANE)
    tm = _round_up(M, _SUBLANE) if M <= 1024 else 512
    M_pad = _round_up(M, tm)

    tn_cands = _divisor_tiles(N_pad, 1024)
    tk_cands = _divisor_tiles(K_pad, 4096)
    tn, tk = _LANE, _LANE
    found = False
    for tk_c in tk_cands:                     # largest tk first => prefer single-K
        for tn_c in tn_cands:
            if _footprint(tm, tn_c, tk_c, op_isz, out_isz,
                          tk_c < K_pad) <= budget:
                tn, tk, found = tn_c, tk_c, True
                break
        if found:
            break

    # v7x has 2 TensorCores: keep >= 2 (i, j) grid points on non-trivial
    # problems so the "parallel" axes can actually shard.
    if (M_pad // tm == 1 and N_pad // tn == 1 and 2 * M * N * K >= (1 << 24)):
        smaller = [t for t in tn_cands if t <= tn // 2]
        if smaller:
            tn = smaller[0]

    return M_pad, N_pad, K_pad, tm, tn, tk


# ----------------------------------------------------------------------------
# Public wrapper
# ----------------------------------------------------------------------------
def fully_connected(x, weight, bias=None, *, activation="linear",
                    lr_multiplier=1.0, compute_dtype=None, k_tile=None):
    """Pallas TPU implementation of FullyConnectedLayer.forward.

    x:      (M, K) float array
    weight: (N, K) float array   (out_features, in_features — PyTorch layout)
    bias:   (N,)   float array or None
    compute_dtype: optional opt-in operand dtype for the MXU (e.g. bf16).
    k_tile: optional explicit K tile override (testing / tuning).
    """
    assert activation in ("linear", "lrelu", "relu"), activation
    M, K = x.shape
    N, K2 = weight.shape
    assert K == K2, "in_features mismatch"
    weight_gain = float(lr_multiplier) / math.sqrt(K)
    bias_gain = float(lr_multiplier)
    has_bias = bias is not None

    op_dtype = jnp.dtype(compute_dtype) if compute_dtype is not None else x.dtype
    out_dtype = x.dtype
    op_isz = op_dtype.itemsize
    out_isz = jnp.dtype(out_dtype).itemsize

    M_pad, N_pad, K_pad, tm, tn, tk = _plan(M, N, K, op_isz, out_isz,
                                            _PLAN_BUDGET_BYTES)
    if k_tile is not None:
        assert k_tile % _LANE == 0 and K_pad % k_tile == 0
        tk = k_tile
    multi_k = tk < K_pad

    fp = _footprint(tm, tn, tk, op_isz, out_isz, multi_k)
    vmem_limit = min(max(fp + 8 * 1024 * 1024, 32 * 1024 * 1024),
                     56 * 1024 * 1024)   # stays inside v7x's 64 MiB VMEM

    # --- pad (zeros along K contribute nothing; extra M/N sliced off) -------
    # TODO(synk): in a real model, pre-pad/cast the (N, K) weight once outside
    # the hot path (it is a parameter) to avoid the per-call HBM rewrite.
    x_p = x
    if (M_pad, K_pad) != (M, K):
        x_p = jnp.pad(x, ((0, M_pad - M), (0, K_pad - K)))
    w_p = weight
    if (N_pad, K_pad) != (N, K):
        w_p = jnp.pad(weight, ((0, N_pad - N), (0, K_pad - K)))
    if x_p.dtype != op_dtype:
        x_p = x_p.astype(op_dtype)
    if w_p.dtype != op_dtype:
        w_p = w_p.astype(op_dtype)

    operands = [x_p, w_p]
    if has_bias:
        b_p = bias if N_pad == N else jnp.pad(bias, (0, N_pad - N))
        operands.append(b_p.reshape(1, N_pad))

    # --- grid / specs --------------------------------------------------------
    if multi_k:
        grid = (M_pad // tm, N_pad // tn, K_pad // tk)
        dims = ("parallel", "parallel", "arbitrary")
        x_spec = pl.BlockSpec((tm, tk), lambda i, j, k: (i, k))
        w_spec = pl.BlockSpec((tn, tk), lambda i, j, k: (j, k))
        b_spec = pl.BlockSpec((1, tn), lambda i, j, k: (0, j))
        o_spec = pl.BlockSpec((tm, tn), lambda i, j, k: (i, j))
        scratch = [pltpu.VMEM((tm, tn), jnp.float32)]
        kernel = functools.partial(_fc_kernel_multi, weight_gain=weight_gain,
                                   bias_gain=bias_gain, activation=activation,
                                   has_bias=has_bias)
    else:
        grid = (M_pad // tm, N_pad // tn)
        dims = ("parallel", "parallel")
        x_spec = pl.BlockSpec((tm, K_pad), lambda i, j: (i, 0))
        w_spec = pl.BlockSpec((tn, K_pad), lambda i, j: (j, 0))
        b_spec = pl.BlockSpec((1, tn), lambda i, j: (0, j))
        o_spec = pl.BlockSpec((tm, tn), lambda i, j: (i, j))
        scratch = []
        kernel = functools.partial(_fc_kernel_single, weight_gain=weight_gain,
                                   bias_gain=bias_gain, activation=activation,
                                   has_bias=has_bias)

    in_specs = [x_spec, w_spec] + ([b_spec] if has_bias else [])

    cost = pl.CostEstimate(
        flops=2 * M * N * K,
        transcendentals=0,
        bytes_accessed=(M * K * op_isz + N * K * op_isz
                        + (N * 4 if has_bias else 0) + M * N * out_isz),
    )

    out = pl.pallas_call(
        kernel,
        out_shape=jax.ShapeDtypeStruct((M_pad, N_pad), out_dtype),
        grid_spec=pltpu.PrefetchScalarGridSpec(
            num_scalar_prefetch=0,
            grid=grid,
            in_specs=in_specs,
            out_specs=o_spec,
            scratch_shapes=scratch,
        ),
        compiler_params=pltpu.CompilerParams(
            dimension_semantics=dims,
            vmem_limit_bytes=int(vmem_limit),
        ),
        cost_estimate=cost,
    )(*operands)

    if (M_pad, N_pad) != (M, N):
        out = out[:M, :N]
    return out


# ----------------------------------------------------------------------------
# Reference + tests
# ----------------------------------------------------------------------------
def _reference(x, weight, bias, activation, lr_multiplier):
    weight_gain = lr_multiplier / math.sqrt(x.shape[1])
    w = weight.astype(jnp.float32) * weight_gain
    y = x.astype(jnp.float32) @ w.T
    if bias is not None:
        y = y + (bias.astype(jnp.float32) * lr_multiplier)[None, :]
    if activation == "lrelu":
        y = jnp.where(y >= 0, y, 0.2 * y) * np.sqrt(2.0)
    elif activation == "relu":
        y = jnp.maximum(y, 0.0) * np.sqrt(2.0)
    return y.astype(x.dtype)


if __name__ == "__main__":
    key = jax.random.PRNGKey(0)

    # ---- Test 1: module defaults (linear + bias), small shapes -------------
    in_features, out_features, batch = 32, 32, 8
    kx, kw, key = jax.random.split(key, 3)
    weight = jax.random.normal(kw, (out_features, in_features), jnp.float32)
    bias = jnp.full((out_features,), np.float32(0.0))
    x = jax.random.normal(kx, (batch, in_features), jnp.float32)
    y = jax.block_until_ready(
        fully_connected(x, weight, bias, activation="linear",
                        lr_multiplier=1.0))
    y_ref = _reference(x, weight, bias, "linear", 1.0)
    np.testing.assert_allclose(np.asarray(y), np.asarray(y_ref),
                               rtol=1e-5, atol=1e-5)

    # ---- Test 2: lrelu + lr_multiplier, shapes exercising padding ----------
    in_features, out_features, batch = 320, 80, 40
    lr_multiplier = 0.01
    kx, kw, key = jax.random.split(key, 3)
    weight = jax.random.normal(kw, (out_features, in_features),
                               jnp.float32) / lr_multiplier
    bias = jnp.full((out_features,), np.float32(1.0))
    x = jax.random.normal(kx, (batch, in_features), jnp.float32)
    y = jax.block_until_ready(
        fully_connected(x, weight, bias, activation="lrelu",
                        lr_multiplier=lr_multiplier))
    y_ref = _reference(x, weight, bias, "lrelu", lr_multiplier)
    np.testing.assert_allclose(np.asarray(y), np.asarray(y_ref),
                               rtol=1e-4, atol=1e-4)

    # ---- Test 3: no-bias path ----------------------------------------------
    kx, kw, key = jax.random.split(key, 3)
    weight = jax.random.normal(kw, (64, 48), jnp.float32)
    x = jax.random.normal(kx, (16, 48), jnp.float32)
    y = jax.block_until_ready(
        fully_connected(x, weight, None, activation="linear",
                        lr_multiplier=1.0))
    y_ref = _reference(x, weight, None, "linear", 1.0)
    np.testing.assert_allclose(np.asarray(y), np.asarray(y_ref),
                               rtol=1e-5, atol=1e-5)

    # ---- Test 4: forced multi-K-step path (accumulator kernel) -------------
    kx, kw, key = jax.random.split(key, 3)
    weight = jax.random.normal(kw, (128, 384), jnp.float32)
    bias = jnp.full((128,), np.float32(0.5))
    x = jax.random.normal(kx, (16, 384), jnp.float32)
    y = jax.block_until_ready(
        fully_connected(x, weight, bias, activation="lrelu",
                        lr_multiplier=1.0, k_tile=128))
    y_ref = _reference(x, weight, bias, "lrelu", 1.0)
    np.testing.assert_allclose(np.asarray(y), np.asarray(y_ref),
                               rtol=1e-4, atol=1e-4)

    # ---- Test 5: opt-in bf16 compute path -----------------------------------
    kx, kw, key = jax.random.split(key, 3)
    weight = jax.random.normal(kw, (128, 256), jnp.float32)
    bias = jnp.full((128,), np.float32(0.0))
    x = jax.random.normal(kx, (32, 256), jnp.float32)
    y = jax.block_until_ready(
        fully_connected(x, weight, bias, activation="lrelu",
                        lr_multiplier=1.0, compute_dtype=jnp.bfloat16))
    x_b = x.astype(jnp.bfloat16).astype(jnp.float32)
    w_b = weight.astype(jnp.bfloat16).astype(jnp.float32)
    y_ref = _reference(x_b, w_b, bias, "lrelu", 1.0)
    np.testing.assert_allclose(np.asarray(y), np.asarray(y_ref),
                               rtol=1e-2, atol=1e-2)

    print("KERNEL_OK")
</pallas_src>

<mosaic_0001>
module attributes {stable_mosaic.version = 11 : i64} {
  func.func @_fc_kernel_single(%arg0: i32, %arg1: i32, %arg2: memref<8x128xf32, #tpu.memory_space<vmem>>, %arg3: memref<128x128xf32, #tpu.memory_space<vmem>>, %arg4: memref<1x128xf32, #tpu.memory_space<vmem>>, %arg5: memref<8x128xf32, #tpu.memory_space<vmem>>) attributes {dimension_semantics = [#tpu.dimension_semantics<parallel>, #tpu.dimension_semantics<parallel>], iteration_bounds = array<i64: 1, 1>, scalar_prefetch = 0 : i64, scratch_operands = 0 : i64, tpu.core_type = #tpu.core_type<tc>, window_params = [{transform_indices = @transform_0, window_bounds = array<i64: 8, 128>}, {transform_indices = @transform_1, window_bounds = array<i64: 128, 128>}, {transform_indices = @transform_2, window_bounds = array<i64: 1, 128>}, {transform_indices = @transform_3, window_bounds = array<i64: 8, 128>}]} {
    %c0 = arith.constant 0 : index
    %c0_0 = arith.constant 0 : index
    %0 = vector.load %arg2[%c0, %c0_0] : memref<8x128xf32, #tpu.memory_space<vmem>>, vector<8x128xf32>
    %c0_1 = arith.constant 0 : index
    %c0_2 = arith.constant 0 : index
    %1 = vector.load %arg3[%c0_1, %c0_2] : memref<128x128xf32, #tpu.memory_space<vmem>>, vector<128x128xf32>
    %2 = tpu.transpose %1, [1, 0] : vector<128x128xf32> -> vector<128x128xf32>
    %cst = arith.constant dense<0.000000e+00> : vector<8x128xf32>
    %3 = tpu.matmul %0, %2, %cst {dimension_numbers = #tpu.dot_dimension_numbers<[1], [0], [0], [1], [0, 0, 1, 1], [], []>} : vector<8x128xf32>, vector<128x128xf32>, vector<8x128xf32> -> vector<8x128xf32>
    %c0_3 = arith.constant 0 : index
    %c0_4 = arith.constant 0 : index
    %4 = vector.load %arg4[%c0_3, %c0_4] : memref<1x128xf32, #tpu.memory_space<vmem>>, vector<1x128xf32>
    %cst_5 = arith.constant 0.176776692 : f32
    %5 = vector.broadcast %cst_5 : f32 to vector<8x128xf32>
    %6 = arith.mulf %3, %5 : vector<8x128xf32>
    %cst_6 = arith.constant 1.000000e+00 : f32
    %7 = vector.broadcast %cst_6 : f32 to vector<1x128xf32>
    %8 = arith.mulf %4, %7 : vector<1x128xf32>
    %9 = vector.broadcast %8 : vector<1x128xf32> to vector<8x128xf32>
    %10 = arith.addf %6, %9 : vector<8x128xf32>
    %c0_7 = arith.constant 0 : index
    %c0_8 = arith.constant 0 : index
    %11 = vector.load %arg5[%c0_7, %c0_8] : memref<8x128xf32, #tpu.memory_space<vmem>>, vector<8x128xf32>
    tpu.vector_store %arg5[%c0_7, %c0_8], %10 {strides = array<i32>} : memref<8x128xf32, #tpu.memory_space<vmem>>, vector<8x128xf32>,
    return
  }
  func.func @transform_0(%arg0: i32, %arg1: i32) -> (i32, i32) {
    %c0_i32 = arith.constant 0 : i32
    %c0_i32_0 = arith.constant 0 : i32
    return %arg0, %c0_i32 : i32, i32
  }
  func.func @transform_1(%arg0: i32, %arg1: i32) -> (i32, i32) {
    %c0_i32 = arith.constant 0 : i32
    %c0_i32_0 = arith.constant 0 : i32
    return %arg1, %c0_i32 : i32, i32
  }
  func.func @transform_2(%arg0: i32, %arg1: i32) -> (i32, i32) {
    %c0_i32 = arith.constant 0 : i32
    %c0_i32_0 = arith.constant 0 : i32
    return %c0_i32, %arg1 : i32, i32
  }
  func.func @transform_3(%arg0: i32, %arg1: i32) -> (i32, i32) {
    %c0_i32 = arith.constant 0 : i32
    return %arg0, %arg1 : i32, i32
  }
}

</mosaic_0001>

<bundles_post_ra>
// kernel: tpu_custom_call.1
= control target key start
LH: loop header
LB: loop body
LE: loop exit
PB: predicated region body
PF: predicated region fallthrough
CT: control target
= control target key end

     0   :  { %8 = vsyncpa [#allocation3], 0  ;;  %s385_s0 = inlined_call_operand.hbm [shape: f32[8,128], index: 0, kind: input, shape index: {}]   ;;  %s386_s1 = inlined_call_operand.hbm [shape: f32[128,128], index: 1, kind: input, shape index: {}]   ;;  %s387_s2 = inlined_call_operand.vmem [shape: f32[1,128], index: 2, kind: input, shape index: {}]   ;;  %s388_s3 = inlined_call_operand.hbm [shape: f32[8,128], index: 3, kind: output, shape index: {}]  }
   0x1   :  { %9 = vsyncpa [#allocation6], 0 }
   0x2   :  { %10 = vsyncpa [#allocation4], 0  ;;  %s311_s12 = smov [#allocation2]   ;;  %s312_s14 = smov [#allocation5]  }
   0x3   :  { %s17_s13 = sshll.u32 %s311_s12, 4  ;;  %s26_s15 = sshll.u32 %s312_s14, 4  ;;  %s18_s13 = int_to_ptr.vmem [resolvable:$true] %s17_s13  ;;  %s339_s15 = int_to_ptr.vmem [resolvable:$true] %s26_s15 }
   0x4   :  { %s239_s18 = scalar_lea.hbm %s385_s0, 128 }
   0x5   :  { %p240_p0 = scmp.ne.s32.totalorder %s385_s0, %s239_s18  ;;  %p243_p1 = scmp.lt.u32.totalorder %s239_s18, %s385_s0 }
   0x7   :  { %p245_p2 = pnand %p243_p1, %p240_p0 }
   0x9   :  { %248 = shalt.err (!%p245_p2)
}
   0xa   :  { %s249_s23 = scalar_lea.vmem %s18_s13, 128  ;;  %p254_p4 = scmp.lt.s32.totalorder %s18_s13, %s18_s13 }
   0xb   :  { %p250_p3 = scmp.ne.s32.totalorder %s18_s13, %s249_s23  ;;  %p255_p5 = scmp.lt.s32.totalorder %s249_s23, %s249_s23 }
   0xd   :  { %p256_p6 = por %p255_p5, %p254_p4 }
   0xf   :  { %p257_p7 = pnand %p256_p6, %p250_p3 }
  0x11   :  { %260 = shalt.err (!%p257_p7)
}
  0x12   :  { %20 = dma.hbm_to_vmem [thread:$0]  %s385_s0, 128, %s18_s13, [#allocation3]  }
  0x13   :  { %s261_s28 = scalar_lea.hbm %s386_s1, 2048 }
  0x14   :  { %p262_p8 = scmp.ne.s32.totalorder %s386_s1, %s261_s28  ;;  %p265_p9 = scmp.lt.u32.totalorder %s261_s28, %s386_s1 }
  0x16   :  { %p267_p10 = pnand %p265_p9, %p262_p8 }
  0x18   :  { %270 = shalt.err (!%p267_p10)
}
  0x19   :  { %s271_s6 = scalar_lea.vmem %s339_s15, 2048  ;;  %p276_p12 = scmp.lt.s32.totalorder %s339_s15, %s339_s15 }
  0x1a   :  { %p272_p11 = scmp.ne.s32.totalorder %s339_s15, %s271_s6  ;;  %p277_p13 = scmp.lt.s32.totalorder %s271_s6, %s271_s6 }
  0x1c   :  { %p278_p0 = por %p277_p13, %p276_p12 }
  0x1e   :  { %p279_p1 = pnand %p278_p0, %p272_p11 }
  0x20   :  { %282 = shalt.err (!%p279_p1)
}
  0x21   :  { %s313_s0 = smov 128   ;;  %s314_s7 = smov 8  }
  0x22   :  { %32 = dma.hbm_to_vmem [thread:$0]  %s386_s1, 2048, %s339_s15, [#allocation6], %s313_s0, %s313_s0, %s314_s7  }
  0x23   :  { %305 = dma.done.wait [#allocation3], 128  }
  0x24   :  { %306 = vsyncadd [#allocation3], 4294967168 }
  0x25   :  { %307 = dma.done.wait [#allocation6], 2048  }
  0x26   :  { %308 = vsyncadd [#allocation6], 4294965248  ;;  %v315_v0 = vmov 0.0|0.0   ;;  %vm316_vm0 = vmmov 0   ;;  %v317_v1 = vmov 0.0   ;;  %v42_v2 = vld [vmem:[#allocation5] sm:$0xff] }
  0x27   :  { %207 = vmatprep.subr.bf16.mxu0 %v315_v0  ;;  %204 = vmatprep.mubr.msk.f32.mxu0 %vm316_vm0, %v317_v1  ;;  %v43_v3 = vld [vmem:[#allocation5 + $0x8] sm:$0xff]  ;;  %v44_v5 = vld [vmem:[#allocation5 + $0x10] sm:$0xff]  ;;  %v45_v6 = vld [vmem:[#allocation5 + $0x18] sm:$0xff]  ;;  %s318_s11 = smov [#allocation7]  }
  0x28   :  { %v208_v4 = vpack.c.bf16 %v43_v3, %v42_v2  ;;  %v211_v7 = vpack.c.bf16 %v45_v6, %v44_v5  ;;  %v46_v8 = vld [vmem:[#allocation5 + $0x20] sm:$0xff]  ;;  %v47_v9 = vld [vmem:[#allocation5 + $0x28] sm:$0xff]  ;;  %v48_v11 = vld [vmem:[#allocation5 + $0x30] sm:$0xff]  ;;  %s144_s12 = sshll.u32 %s318_s11, 4  ;;  %s145_s12 = int_to_ptr.vmem [resolvable:$true] %s144_s12 }
  0x29   :  { %v214_v10 = vpack.c.bf16 %v47_v9, %v46_v8  ;;  %v49_v12 = vld [vmem:[#allocation5 + $0x38] sm:$0xff]  ;;  %v50_v14 = vld [vmem:[#allocation5 + $0x40] sm:$0xff]  ;;  %v51_v15 = vld [vmem:[#allocation5 + $0x48] sm:$0xff]  ;;  %s283_s13 = scalar_lea.vmem %s145_s12, 128  ;;  %p288_p3 = scmp.lt.s32.totalorder %s145_s12, %s145_s12 }
  0x2a   :  { %209 = vmatpush3.bf16.xpose.msra.mxu0 %v208_v4  ;;  %v217_v13 = vpack.c.bf16 %v49_v12, %v48_v11  ;;  %v220_v16 = vpack.c.bf16 %v51_v15, %v50_v14  ;;  %v52_v17 = vld [vmem:[#allocation5 + $0x50] sm:$0xff]  ;;  %v53_v18 = vld [vmem:[#allocation5 + $0x58] sm:$0xff]  ;;  %v54_v20 = vld [vmem:[#allocation5 + $0x60] sm:$0xff]  ;;  %p284_p2 = scmp.ne.s32.totalorder %s145_s12, %s283_s13  ;;  %p289_p4 = scmp.lt.s32.totalorder %s283_s13, %s283_s13 }
  0x2b   :  { %210 = vmatprep.subr.bf16.mxu0 %v315_v0  ;;  %v223_v19 = vpack.c.bf16 %v53_v18, %v52_v17  ;;  %v55_v21 = vld [vmem:[#allocation5 + $0x68] sm:$0xff]  ;;  %v56_v23 = vld [vmem:[#allocation5 + $0x70] sm:$0xff]  ;;  %v57_v24 = vld [vmem:[#allocation5 + $0x78] sm:$0xff] }
  0x2c   :  { %v226_v22 = vpack.c.bf16 %v55_v21, %v54_v20  ;;  %v229_v25 = vpack.c.bf16 %v57_v24, %v56_v23  ;;  %v41_v26 = vld [vmem:[#allocation2] sm:$0xff]  ;;  %p290_p5 = por %p289_p4, %p288_p3 }
  0x2d   :  { %v154_v28 = vld [vmem:[%s387_s2] ss:$0 sm:$0xff] }
  0x2e   :  { %p291_p6 = pnand %p290_p5, %p284_p2 }
  0x32   :  { %212 = vmatpush3.bf16.xpose.msra.mxu0 %v211_v7 }
  0x33   :  { %213 = vmatprep.subr.bf16.mxu0 %v315_v0 }
  0x3a   :  { %215 = vmatpush3.bf16.xpose.msra.mxu0 %v214_v10 }
  0x3b   :  { %216 = vmatprep.subr.bf16.mxu0 %v315_v0 }
  0x42   :  { %218 = vmatpush3.bf16.xpose.msra.mxu0 %v217_v13 }
  0x43   :  { %219 = vmatprep.subr.bf16.mxu0 %v315_v0 }
  0x4a   :  { %221 = vmatpush3.bf16.xpose.msra.mxu0 %v220_v16 }
  0x4b   :  { %222 = vmatprep.subr.bf16.mxu0 %v315_v0 }
  0x52   :  { %224 = vmatpush3.bf16.xpose.msra.mxu0 %v223_v19 }
  0x53   :  { %225 = vmatprep.subr.bf16.mxu0 %v315_v0 }
  0x5a   :  { %227 = vmatpush3.bf16.xpose.msra.mxu0 %v226_v22 }
  0x5b   :  { %228 = vmatprep.subr.bf16.mxu0 %v315_v0 }
  0x62   :  { %230 = vmatpush3.bf16.xpose.msra.mxu0 %v229_v25 }
  0x69   :  { %205 = vmatmul.mubr.f32.vlgmr.msra.gmra.mrb[0].mxu0 %v41_v26 }
 0x13c   :  { %v124_v27 = vpop.f32.mrb[0].mxu0 }
 0x13d   :  { %v129_v29 = vmul.f32 0.17677669, %v124_v27  ;;  %v206_v30 = vpop.f32.mrb[1].mxu0 }
 0x13f   :  { %v136_v31 = vadd.f32 %v154_v28, %v129_v29 }
 0x141   :  { %137 = vst [vmem:[#allocation7] sm:$0xff] %v136_v31 }
 0x142   :  { %294 = shalt.err (!%p291_p6)
}
 0x143   :  { %s295_s16 = scalar_lea.hbm %s388_s3, 128 }
 0x144   :  { %p296_p7 = scmp.ne.s32.totalorder %s388_s3, %s295_s16  ;;  %p299_p8 = scmp.lt.u32.totalorder %s295_s16, %s388_s3 }
 0x146   :  { %p301_p9 = pnand %p299_p8, %p296_p7 }
 0x148   :  { %304 = shalt.err (!%p301_p9)
}
 0x149   :  { %147 = dma.vmem_to_hbm [thread:$0]  %s145_s12, 128, %s388_s3, [#allocation4]  }
 0x14a   :  { %309 = dma.done.wait [#allocation4], 128  }
 0x14b   :  { %310 = vsyncadd [#allocation4], 4294967168 }
 0x14c   :  { %151 = vsyncpa [#allocation3], 1 }
 0x14d   :  { %152 = vsyncpa [#allocation6], 1 }
 0x14e   :  { %153 = vsyncpa [#allocation4], 1 }

</bundles_post_ra>
